<compile_context>
chip_gen: v7x
topology: tpu7x:2x2x1
jax: 0.10.0
libtpu: 0.0.40
codegen_flags: <defaults>
</compile_context>

<pallas_src>
import functools

import jax
import jax.numpy as jnp
from jax.experimental import pallas as pl
from jax.experimental.pallas import tpu as pltpu


def _round_up(x, m):
    return (x + m - 1) // m * m


@functools.partial(jax.jit, static_argnames=("stride", "dilation", "eps"))
def conv_layer_forward(x_nchw, weight, bn_gamma, bn_beta, bn_mean, bn_var,
                       prelu_alpha, *, stride=(1, 1), dilation=(1, 1), eps=1e-5):
    """ConvLayer forward. x_nchw: (N, Cin, H, W); weight: (Cout, Cin, kh, kw)."""
    N, Cin, H, W = x_nchw.shape
    Cout, _, kh, kw = weight.shape
    sh, sw = stride
    dh, dw = dilation
    # auto_padding (same formula as the PyTorch module)
    ph, pw = (kh - 1) // 2 * dh, (kw - 1) // 2 * dw

    Hp, Wp = H + 2 * ph, W + 2 * pw
    Ho1 = Hp - dh * (kh - 1)                        # dense (stride-1) output rows
    Ho = (Hp - dh * (kh - 1) - 1) // sh + 1         # true output rows
    Wo = (Wp - dw * (kw - 1) - 1) // sw + 1         # true output cols

    LANE = 128
    L = Ho1 * Wp                    # dense output positions per image (junk cols incl.)
    L_pad = _round_up(L, LANE)      # lane-padded output width -> full-width stores

    # In-kernel lane chunk: bound the f32 accumulator (Cout x LB) to ~128 KiB of vregs
    # so wide-channel instantiations of this layer do not spill.
    max_lb = max(LANE, ((128 * 1024) // (max(Cout, 1) * 4)) // LANE * LANE)
    LB = min(512, max_lb)

    # flat-input length needed so every tap slice of width L_pad stays in bounds
    p_need = (kh - 1) * dh * Wp + (kw - 1) * dw + L_pad
    extra_rows = max(0, (p_need - Hp * Wp + Wp - 1) // Wp)
    Hp_tot = Hp + extra_rows
    P_full = Hp_tot * Wp

    # Single pad pass on bf16 activations (spatial pad + tail rows), then a free
    # reshape into the flattened channel-major slab the kernel consumes.
    xb = x_nchw.astype(jnp.bfloat16)
    xp = jnp.pad(xb, ((0, 0), (0, 0), (ph, ph + extra_rows), (pw, pw)))
    x_flat = xp.reshape(N, Cin, P_full)

    # Fold eval-mode BatchNorm scale into the conv weights; keep shift + PReLU alpha.
    inv_std = jax.lax.rsqrt(bn_var.astype(jnp.float32) + eps)
    scale = bn_gamma.astype(jnp.float32) * inv_std                       # (Cout,)
    shift = bn_beta.astype(jnp.float32) - bn_mean.astype(jnp.float32) * scale
    w_taps = jnp.transpose(weight.astype(jnp.float32), (2, 3, 0, 1))     # (kh,kw,Cout,Cin)
    w_taps = (w_taps * scale[None, None, :, None]).reshape(kh * kw, Cout, Cin)
    w_taps = w_taps.astype(jnp.bfloat16)
    shift2d = shift.reshape(Cout, 1)
    alpha2d = prelu_alpha.astype(jnp.float32).reshape(Cout, 1)

    taps = tuple((ki, kj) for ki in range(kh) for kj in range(kw))

    def kernel(x_ref, w_ref, shift_ref, alpha_ref, o_ref):
        w_all = w_ref[...]              # (kh*kw, Cout, Cin) bf16, tiny & resident
        b = shift_ref[...]              # (Cout, 1) f32
        a = alpha_ref[...]              # (Cout, 1) f32
        for c0 in range(0, L_pad, LB):              # static chunk loop
            wc = min(LB, L_pad - c0)                # multiple of 128
            acc = jnp.zeros((Cout, wc), jnp.float32)
            for t, (ki, kj) in enumerate(taps):     # static tap loop, f32 accumulate
                off = ki * dh * Wp + kj * dw + c0
                x_t = x_ref[:, off:off + wc]        # (Cin, wc) bf16, read in place
                acc = acc + jnp.dot(w_all[t], x_t,
                                    preferred_element_type=jnp.float32)
            y = acc + b                                            # folded BN shift
            o_ref[:, c0:c0 + wc] = jnp.where(y > 0.0, y, a * y)    # PReLU (f32)

    # Explicit VMEM budget (double-buffered blocks + headroom) so the same tiling
    # fits v7x's 64 MiB VMEM without silent pipeline shrinkage.
    vmem_bytes = (
        2 * _round_up(Cin, 16) * _round_up(P_full, LANE) * 2          # x blocks (bf16)
        + 2 * (kh * kw) * _round_up(Cout, 16) * LANE * 2              # weights (bf16)
        + 4 * _round_up(Cout, 8) * LANE * 4                           # shift/alpha
        + 2 * _round_up(Cout, 8) * L_pad * 4                          # output blocks
        + 4 * _round_up(Cout, 8) * LB * 4                             # acc live values
    )
    vmem_limit = int(min(max(4 * vmem_bytes, 8 * 1024 * 1024), 48 * 1024 * 1024))

    flops = 2 * N * (kh * kw) * Cin * Cout * L_pad
    bytes_accessed = (x_flat.size * 2 + w_taps.size * 2
                      + (shift2d.size + alpha2d.size) * 4
                      + N * Cout * L_pad * 4)

    out_flat = pl.pallas_call(
        kernel,
        out_shape=jax.ShapeDtypeStruct((N, Cout, L_pad), jnp.float32),
        grid=(N,),
        in_specs=[
            pl.BlockSpec((None, Cin, P_full), lambda n: (n, 0, 0)),
            pl.BlockSpec((kh * kw, Cout, Cin), lambda n: (0, 0, 0)),
            pl.BlockSpec((Cout, 1), lambda n: (0, 0)),
            pl.BlockSpec((Cout, 1), lambda n: (0, 0)),
        ],
        out_specs=pl.BlockSpec((None, Cout, L_pad), lambda n: (n, 0, 0)),
        compiler_params=pltpu.CompilerParams(
            dimension_semantics=("parallel",),
            vmem_limit_bytes=vmem_limit),
        cost_estimate=pl.CostEstimate(flops=flops, transcendentals=0,
                                      bytes_accessed=bytes_accessed),
    )(x_flat, w_taps, shift2d, alpha2d)

    # Drop lane padding / junk columns, subsample for stride; already NCHW.
    out = out_flat[:, :, :L].reshape(N, Cout, Ho1, Wp)
    out = out[:, :, ::sh, ::sw][:, :, :Ho, :Wo]
    return out


def _reference(x_nchw, weight, bn_gamma, bn_beta, bn_mean, bn_var, prelu_alpha,
               stride=(1, 1), dilation=(1, 1), eps=1e-5):
    """Plain-JAX reference (lax conv) for a sanity check."""
    Cout, _, kh, kw = weight.shape
    padding = ((kh - 1) // 2 * dilation[0], (kw - 1) // 2 * dilation[1])
    y = jax.lax.conv_general_dilated(
        x_nchw.astype(jnp.float32), weight.astype(jnp.float32),
        window_strides=stride,
        padding=[(padding[0], padding[0]), (padding[1], padding[1])],
        rhs_dilation=dilation,
        dimension_numbers=("NCHW", "OIHW", "NCHW"))
    inv_std = 1.0 / jnp.sqrt(bn_var + eps)
    scale = (bn_gamma * inv_std).reshape(1, Cout, 1, 1)
    shift = (bn_beta - bn_mean * bn_gamma * inv_std).reshape(1, Cout, 1, 1)
    y = y * scale + shift
    a = prelu_alpha.reshape(1, Cout, 1, 1)
    return jnp.where(y > 0.0, y, a * y)


if __name__ == "__main__":
    key = jax.random.PRNGKey(0)
    k_x, k_w, k_g, k_b, k_m, k_v = jax.random.split(key, 6)

    N, Cin, H, W = 2, 4, 16, 16
    Cout, ksize = 8, 3

    x = jax.random.normal(k_x, (N, Cin, H, W), dtype=jnp.float32)
    weight = jax.random.normal(k_w, (Cout, Cin, ksize, ksize), dtype=jnp.float32) * 0.1
    bn_gamma = 1.0 + 0.1 * jax.random.normal(k_g, (Cout,), dtype=jnp.float32)
    bn_beta = 0.1 * jax.random.normal(k_b, (Cout,), dtype=jnp.float32)
    bn_mean = 0.1 * jax.random.normal(k_m, (Cout,), dtype=jnp.float32)
    bn_var = jnp.abs(1.0 + 0.1 * jax.random.normal(k_v, (Cout,), dtype=jnp.float32))
    prelu_alpha = jnp.full((Cout,), 0.25, dtype=jnp.float32)  # PReLU default init

    out = conv_layer_forward(x, weight, bn_gamma, bn_beta, bn_mean, bn_var,
                             prelu_alpha, stride=(1, 1), dilation=(1, 1))
    out = jax.block_until_ready(out)

    ref = _reference(x, weight, bn_gamma, bn_beta, bn_mean, bn_var, prelu_alpha)
    assert out.shape == (N, Cout, H, W), out.shape
    # bf16 MXU operands (f32 accumulation) -> relaxed tolerance vs f32 reference.
    assert jnp.allclose(out, ref, rtol=2e-2, atol=2e-2), "mismatch vs reference"

    print("KERNEL_OK")
</pallas_src>

<mosaic_0001>
module attributes {stable_mosaic.version = 11 : i64} {
  func.func @kernel(%arg0: i32, %arg1: memref<1x4x432xbf16, #tpu.memory_space<vmem>>, %arg2: memref<9x8x4xbf16, #tpu.memory_space<vmem>>, %arg3: memref<8x1xf32, #tpu.memory_space<vmem>>, %arg4: memref<8x1xf32, #tpu.memory_space<vmem>>, %arg5: memref<1x8x384xf32, #tpu.memory_space<vmem>>) attributes {dimension_semantics = [#tpu.dimension_semantics<parallel>], iteration_bounds = array<i64: 2>, scalar_prefetch = 0 : i64, scratch_operands = 0 : i64, tpu.core_type = #tpu.core_type<tc>, window_params = [{transform_indices = @transform_0, window_bounds = array<i64: 1, 4, 432>}, {pipeline_mode = #tpu.pipeline_mode<synchronous>, transform_indices = @transform_1, window_bounds = array<i64: 9, 8, 4>}, {pipeline_mode = #tpu.pipeline_mode<synchronous>, transform_indices = @transform_2, window_bounds = array<i64: 8, 1>}, {pipeline_mode = #tpu.pipeline_mode<synchronous>, transform_indices = @transform_3, window_bounds = array<i64: 8, 1>}, {transform_indices = @transform_4, window_bounds = array<i64: 1, 8, 384>}]} {
    %c0 = arith.constant 0 : index
    %c0_0 = arith.constant 0 : index
    %c0_1 = arith.constant 0 : index
    %0 = vector.load %arg2[%c0, %c0_0, %c0_1] : memref<9x8x4xbf16, #tpu.memory_space<vmem>>, vector<9x8x4xbf16>
    %c0_2 = arith.constant 0 : index
    %c0_3 = arith.constant 0 : index
    %1 = vector.load %arg3[%c0_2, %c0_3] : memref<8x1xf32, #tpu.memory_space<vmem>>, vector<8x1xf32>
    %c0_4 = arith.constant 0 : index
    %c0_5 = arith.constant 0 : index
    %2 = vector.load %arg4[%c0_4, %c0_5] : memref<8x1xf32, #tpu.memory_space<vmem>>, vector<8x1xf32>
    %cst = arith.constant 0.000000e+00 : f32
    %3 = vector.broadcast %cst : f32 to vector<8x384xf32>
    %c0_6 = arith.constant 0 : index
    %c0_7 = arith.constant 0 : index
    %c0_8 = arith.constant 0 : index
    %4 = vector.load %arg1[%c0_6, %c0_7, %c0_8] : memref<1x4x432xbf16, #tpu.memory_space<vmem>>, vector<1x4x384xbf16>
    %5 = vector.shape_cast %4 : vector<1x4x384xbf16> to vector<4x384xbf16>
    %6 = vector.extract_strided_slice %0 {offsets = [0, 0, 0], sizes = [1, 8, 4], strides = [1, 1, 1]} : vector<9x8x4xbf16> to vector<1x8x4xbf16>
    %7 = vector.shape_cast %6 : vector<1x8x4xbf16> to vector<8x4xbf16>
    %cst_9 = arith.constant dense<0.000000e+00> : vector<8x384xf32>
    %8 = tpu.matmul %7, %5, %cst_9 {dimension_numbers = #tpu.dot_dimension_numbers<[1], [0], [0], [1], [0, 0, 1, 1], [], []>} : vector<8x4xbf16>, vector<4x384xbf16>, vector<8x384xf32> -> vector<8x384xf32>
    %9 = arith.addf %3, %8 : vector<8x384xf32>
    %c0_10 = arith.constant 0 : index
    %c0_11 = arith.constant 0 : index
    %c1 = arith.constant 1 : index
    %10 = vector.load %arg1[%c0_10, %c0_11, %c1] : memref<1x4x432xbf16, #tpu.memory_space<vmem>>, vector<1x4x384xbf16>
    %11 = vector.shape_cast %10 : vector<1x4x384xbf16> to vector<4x384xbf16>
    %12 = vector.extract_strided_slice %0 {offsets = [1, 0, 0], sizes = [1, 8, 4], strides = [1, 1, 1]} : vector<9x8x4xbf16> to vector<1x8x4xbf16>
    %13 = vector.shape_cast %12 : vector<1x8x4xbf16> to vector<8x4xbf16>
    %cst_12 = arith.constant dense<0.000000e+00> : vector<8x384xf32>
    %14 = tpu.matmul %13, %11, %cst_12 {dimension_numbers = #tpu.dot_dimension_numbers<[1], [0], [0], [1], [0, 0, 1, 1], [], []>} : vector<8x4xbf16>, vector<4x384xbf16>, vector<8x384xf32> -> vector<8x384xf32>
    %15 = arith.addf %9, %14 : vector<8x384xf32>
    %c0_13 = arith.constant 0 : index
    %c0_14 = arith.constant 0 : index
    %c2 = arith.constant 2 : index
    %16 = vector.load %arg1[%c0_13, %c0_14, %c2] : memref<1x4x432xbf16, #tpu.memory_space<vmem>>, vector<1x4x384xbf16>
    %17 = vector.shape_cast %16 : vector<1x4x384xbf16> to vector<4x384xbf16>
    %18 = vector.extract_strided_slice %0 {offsets = [2, 0, 0], sizes = [1, 8, 4], strides = [1, 1, 1]} : vector<9x8x4xbf16> to vector<1x8x4xbf16>
    %19 = vector.shape_cast %18 : vector<1x8x4xbf16> to vector<8x4xbf16>
    %cst_15 = arith.constant dense<0.000000e+00> : vector<8x384xf32>
    %20 = tpu.matmul %19, %17, %cst_15 {dimension_numbers = #tpu.dot_dimension_numbers<[1], [0], [0], [1], [0, 0, 1, 1], [], []>} : vector<8x4xbf16>, vector<4x384xbf16>, vector<8x384xf32> -> vector<8x384xf32>
    %21 = arith.addf %15, %20 : vector<8x384xf32>
    %c0_16 = arith.constant 0 : index
    %c0_17 = arith.constant 0 : index
    %c18 = arith.constant 18 : index
    %22 = vector.load %arg1[%c0_16, %c0_17, %c18] : memref<1x4x432xbf16, #tpu.memory_space<vmem>>, vector<1x4x384xbf16>
    %23 = vector.shape_cast %22 : vector<1x4x384xbf16> to vector<4x384xbf16>
    %24 = vector.extract_strided_slice %0 {offsets = [3, 0, 0], sizes = [1, 8, 4], strides = [1, 1, 1]} : vector<9x8x4xbf16> to vector<1x8x4xbf16>
    %25 = vector.shape_cast %24 : vector<1x8x4xbf16> to vector<8x4xbf16>
    %cst_18 = arith.constant dense<0.000000e+00> : vector<8x384xf32>
    %26 = tpu.matmul %25, %23, %cst_18 {dimension_numbers = #tpu.dot_dimension_numbers<[1], [0], [0], [1], [0, 0, 1, 1], [], []>} : vector<8x4xbf16>, vector<4x384xbf16>, vector<8x384xf32> -> vector<8x384xf32>
    %27 = arith.addf %21, %26 : vector<8x384xf32>
    %c0_19 = arith.constant 0 : index
    %c0_20 = arith.constant 0 : index
    %c19 = arith.constant 19 : index
    %28 = vector.load %arg1[%c0_19, %c0_20, %c19] : memref<1x4x432xbf16, #tpu.memory_space<vmem>>, vector<1x4x384xbf16>
    %29 = vector.shape_cast %28 : vector<1x4x384xbf16> to vector<4x384xbf16>
    %30 = vector.extract_strided_slice %0 {offsets = [4, 0, 0], sizes = [1, 8, 4], strides = [1, 1, 1]} : vector<9x8x4xbf16> to vector<1x8x4xbf16>
    %31 = vector.shape_cast %30 : vector<1x8x4xbf16> to vector<8x4xbf16>
    %cst_21 = arith.constant dense<0.000000e+00> : vector<8x384xf32>
    %32 = tpu.matmul %31, %29, %cst_21 {dimension_numbers = #tpu.dot_dimension_numbers<[1], [0], [0], [1], [0, 0, 1, 1], [], []>} : vector<8x4xbf16>, vector<4x384xbf16>, vector<8x384xf32> -> vector<8x384xf32>
    %33 = arith.addf %27, %32 : vector<8x384xf32>
    %c0_22 = arith.constant 0 : index
    %c0_23 = arith.constant 0 : index
    %c20 = arith.constant 20 : index
    %34 = vector.load %arg1[%c0_22, %c0_23, %c20] : memref<1x4x432xbf16, #tpu.memory_space<vmem>>, vector<1x4x384xbf16>
    %35 = vector.shape_cast %34 : vector<1x4x384xbf16> to vector<4x384xbf16>
    %36 = vector.extract_strided_slice %0 {offsets = [5, 0, 0], sizes = [1, 8, 4], strides = [1, 1, 1]} : vector<9x8x4xbf16> to vector<1x8x4xbf16>
    %37 = vector.shape_cast %36 : vector<1x8x4xbf16> to vector<8x4xbf16>
    %cst_24 = arith.constant dense<0.000000e+00> : vector<8x384xf32>
    %38 = tpu.matmul %37, %35, %cst_24 {dimension_numbers = #tpu.dot_dimension_numbers<[1], [0], [0], [1], [0, 0, 1, 1], [], []>} : vector<8x4xbf16>, vector<4x384xbf16>, vector<8x384xf32> -> vector<8x384xf32>
    %39 = arith.addf %33, %38 : vector<8x384xf32>
    %c0_25 = arith.constant 0 : index
    %c0_26 = arith.constant 0 : index
    %c36 = arith.constant 36 : index
    %40 = vector.load %arg1[%c0_25, %c0_26, %c36] : memref<1x4x432xbf16, #tpu.memory_space<vmem>>, vector<1x4x384xbf16>
    %41 = vector.shape_cast %40 : vector<1x4x384xbf16> to vector<4x384xbf16>
    %42 = vector.extract_strided_slice %0 {offsets = [6, 0, 0], sizes = [1, 8, 4], strides = [1, 1, 1]} : vector<9x8x4xbf16> to vector<1x8x4xbf16>
    %43 = vector.shape_cast %42 : vector<1x8x4xbf16> to vector<8x4xbf16>
    %cst_27 = arith.constant dense<0.000000e+00> : vector<8x384xf32>
    %44 = tpu.matmul %43, %41, %cst_27 {dimension_numbers = #tpu.dot_dimension_numbers<[1], [0], [0], [1], [0, 0, 1, 1], [], []>} : vector<8x4xbf16>, vector<4x384xbf16>, vector<8x384xf32> -> vector<8x384xf32>
    %45 = arith.addf %39, %44 : vector<8x384xf32>
    %c0_28 = arith.constant 0 : index
    %c0_29 = arith.constant 0 : index
    %c37 = arith.constant 37 : index
    %46 = vector.load %arg1[%c0_28, %c0_29, %c37] : memref<1x4x432xbf16, #tpu.memory_space<vmem>>, vector<1x4x384xbf16>
    %47 = vector.shape_cast %46 : vector<1x4x384xbf16> to vector<4x384xbf16>
    %48 = vector.extract_strided_slice %0 {offsets = [7, 0, 0], sizes = [1, 8, 4], strides = [1, 1, 1]} : vector<9x8x4xbf16> to vector<1x8x4xbf16>
    %49 = vector.shape_cast %48 : vector<1x8x4xbf16> to vector<8x4xbf16>
    %cst_30 = arith.constant dense<0.000000e+00> : vector<8x384xf32>
    %50 = tpu.matmul %49, %47, %cst_30 {dimension_numbers = #tpu.dot_dimension_numbers<[1], [0], [0], [1], [0, 0, 1, 1], [], []>} : vector<8x4xbf16>, vector<4x384xbf16>, vector<8x384xf32> -> vector<8x384xf32>
    %51 = arith.addf %45, %50 : vector<8x384xf32>
    %c0_31 = arith.constant 0 : index
    %c0_32 = arith.constant 0 : index
    %c38 = arith.constant 38 : index
    %52 = vector.load %arg1[%c0_31, %c0_32, %c38] : memref<1x4x432xbf16, #tpu.memory_space<vmem>>, vector<1x4x384xbf16>
    %53 = vector.shape_cast %52 : vector<1x4x384xbf16> to vector<4x384xbf16>
    %54 = vector.extract_strided_slice %0 {offsets = [8, 0, 0], sizes = [1, 8, 4], strides = [1, 1, 1]} : vector<9x8x4xbf16> to vector<1x8x4xbf16>
    %55 = vector.shape_cast %54 : vector<1x8x4xbf16> to vector<8x4xbf16>
    %cst_33 = arith.constant dense<0.000000e+00> : vector<8x384xf32>
    %56 = tpu.matmul %55, %53, %cst_33 {dimension_numbers = #tpu.dot_dimension_numbers<[1], [0], [0], [1], [0, 0, 1, 1], [], []>} : vector<8x4xbf16>, vector<4x384xbf16>, vector<8x384xf32> -> vector<8x384xf32>
    %57 = arith.addf %51, %56 : vector<8x384xf32>
    %58 = vector.broadcast %1 : vector<8x1xf32> to vector<8x384xf32>
    %59 = arith.addf %57, %58 : vector<8x384xf32>
    %cst_34 = arith.constant 0.000000e+00 : f32
    %60 = vector.broadcast %cst_34 : f32 to vector<8x384xf32>
    %61 = arith.cmpf ogt, %59, %60 : vector<8x384xf32>
    %62 = vector.broadcast %2 : vector<8x1xf32> to vector<8x384xf32>
    %63 = arith.mulf %62, %59 : vector<8x384xf32>
    %64 = arith.select %61, %59, %63 : vector<8x384xi1>, vector<8x384xf32>
    %c0_35 = arith.constant 0 : index
    %c0_36 = arith.constant 0 : index
    %c0_37 = arith.constant 0 : index
    %65 = vector.load %arg5[%c0_35, %c0_36, %c0_37] : memref<1x8x384xf32, #tpu.memory_space<vmem>>, vector<1x8x384xf32>
    %66 = vector.shape_cast %65 : vector<1x8x384xf32> to vector<8x384xf32>
    %67 = vector.shape_cast %64 : vector<8x384xf32> to vector<1x8x384xf32>
    tpu.vector_store %arg5[%c0_35, %c0_36, %c0_37], %67 {strides = array<i32>} : memref<1x8x384xf32, #tpu.memory_space<vmem>>, vector<1x8x384xf32>,
    return
  }
  func.func @transform_0(%arg0: i32) -> (i32, i32, i32) {
    %c0_i32 = arith.constant 0 : i32
    %c0_i32_0 = arith.constant 0 : i32
    %c0_i32_1 = arith.constant 0 : i32
    return %arg0, %c0_i32, %c0_i32_0 : i32, i32, i32
  }
  func.func @transform_1(%arg0: i32) -> (i32, i32, i32) {
    %c0_i32 = arith.constant 0 : i32
    %c0_i32_0 = arith.constant 0 : i32
    %c0_i32_1 = arith.constant 0 : i32
    %c0_i32_2 = arith.constant 0 : i32
    return %c0_i32, %c0_i32_0, %c0_i32_1 : i32, i32, i32
  }
  func.func @transform_2(%arg0: i32) -> (i32, i32) {
    %c0_i32 = arith.constant 0 : i32
    %c0_i32_0 = arith.constant 0 : i32
    %c0_i32_1 = arith.constant 0 : i32
    return %c0_i32, %c0_i32_0 : i32, i32
  }
  func.func @transform_3(%arg0: i32) -> (i32, i32) {
    %c0_i32 = arith.constant 0 : i32
    %c0_i32_0 = arith.constant 0 : i32
    %c0_i32_1 = arith.constant 0 : i32
    return %c0_i32, %c0_i32_0 : i32, i32
  }
  func.func @transform_4(%arg0: i32) -> (i32, i32, i32) {
    %c0_i32 = arith.constant 0 : i32
    %c0_i32_0 = arith.constant 0 : i32
    %c0_i32_1 = arith.constant 0 : i32
    return %arg0, %c0_i32, %c0_i32_0 : i32, i32, i32
  }
}

</mosaic_0001>

<bundles_post_ra>
// kernel: conv_layer_forward.1
= control target key start
LH: loop header
LB: loop body
LE: loop exit
PB: predicated region body
PF: predicated region fallthrough
CT: control target
= control target key end

     0   :  { %s1596_s15 = smov 0   ;;  %s1741_s0 = inlined_call_operand.vmem [shape: bf16[2,4,432], index: 0, kind: input, shape index: {}]   ;;  %s1742_s1 = inlined_call_operand.vmem [shape: bf16[9,8,4], index: 1, kind: input, shape index: {}]   ;;  %s1743_s2 = inlined_call_operand.vmem [shape: f32[8,1], index: 2, kind: input, shape index: {}]   ;;  %s1744_s3 = inlined_call_operand.vmem [shape: f32[8,1], index: 3, kind: input, shape index: {}]   ;;  %s1745_s4 = inlined_call_operand.vmem [shape: f32[2,8,384], index: 4, kind: output, shape index: {}]  }
   0x1 LB: > { %s1416_s16 = sadd.s32 4294967295, %s1557_s15   ;;  %p1420_p0 = scmp.ge.s32.totalorder %s1557_s15, 1  ;;  %s1557_s15 = sphi %s1596_s15, %s14_s15  }
   0x2   : > { %p162_p1 = scmp.lt.s32.totalorder %s1557_s15, 3 }
   0x4   : > { %p163_p2 = pnand %p1420_p0, %p162_p1 }
   0x5   : > { %p188_p3 = scmp.lt.s32.totalorder (!%p163_p2), %s1416_s16, 1  ;;  %v217_v0 = vlaneseq (!%p163_p2)  ;;  %v1559_v1 = vmov (!%p163_p2), 1983009808   ;;  %v1560_v5 = vmov (!%p163_p2), 0.0   ;;  %v1561_v6 = vmov (!%p163_p2), 0   ;;  %s1563_s21 = smov (!%p163_p2), 127  }
   0x6   : > { %166 = sbr.rel (%p163_p2) target bundleno = 429 (0x1ad), region = 36  ;;  %v215_v2 = vunpack.c.l.s4 (!%p163_p2), %v1559_v1  ;;  %1472 = vmatprep.subr.bf16.mxu1 (!%p163_p2), %v1560_v5  ;;  %288 = vmatprep.mubr.bf16.mxu0 (!%p163_p2), %v1561_v6  ;;  %vm1562_vm0 = vmmov (!%p163_p2), 0   ;;  %s1564_s22 = smov (!%p163_p2), 126   ;;  %v208_v18 = vld [vmem:[%s1743_s2] sm:$0xff] (!%p163_p2)  ;;  %vm238_vm1 = vcmask (!%p163_p2), 1039360   ;;  %vm246_vm2 = vcmask (!%p163_p2), 1041408  }
   0x7   : > { %v218_v3 = vshrl.u32 (!%p163_p2), %v217_v0, 7  ;;  %1547 = vset.pattern.permute.xlu0 (!%p163_p2), %v1561_v6  ;;  %1548 = vset.pattern.permute.xlu1 (!%p163_p2), %v1561_v6  ;;  %s1565_s23 = smov (!%p163_p2), 110   ;;  %s1566_s24 = smov (!%p163_p2), 109   ;;  %v209_v19 = vld [vmem:[%s1744_s3] sm:$0xff] (!%p163_p2)  ;;  %vm242_vm3 = vcmask (!%p163_p2), 31744   ;;  %vm474_vm4 = vcmask (!%p163_p2), 1031168  }
   0x8   : > { %v216_v4 = vunpack.c.0.s8 (!%p163_p2), %v215_v2  ;;  %1474 = vmatprep.mubr.msk.bf16.mxu1 (!%p163_p2), %vm1562_vm0, %v1560_v5  ;;  %s1567_s25 = smov (!%p163_p2), 108   ;;  %s1568_s26 = smov (!%p163_p2), 92   ;;  %v200_v29 = vld [vmem:[%s1742_s1 + $0x4] sm:$0xf] (!%p163_p2)  ;;  %v199_v40 = vld [vmem:[%s1742_s1] sm:$0xf] (!%p163_p2) }
   0x9   : > { %s1569_s27 = smov (!%p163_p2), 91   ;;  %s1570_s28 = smov (!%p163_p2), 90   ;;  %vm601_vm5 = vcmask (!%p163_p2), 900096   ;;  %v201_v50 = vld [vmem:[%s1742_s1 + $0x8] sm:$0xf] (!%p163_p2)  ;;  %vm728_vm6 = vcmask (!%p163_p2), 891904  }
   0xa   : > { %v219_v7 = vsub.s32 (!%p163_p2), %v216_v4, %v218_v3  ;;  %v202_v60 = vld [vmem:[%s1742_s1 + $0xc] sm:$0xf] (!%p163_p2)  ;;  %vm855_vm7 = vcmask (!%p163_p2), 883712   ;;  %vm982_vm8 = vcmask (!%p163_p2), 752640   ;;  %vm1109_vm9 = vcmask (!%p163_p2), 744448  }
   0xb   : > { %vm1236_vm10 = vcmask (!%p163_p2), 736256  }
   0xd   : > { %s1747_s16 = smov (!%p188_p3, %s1416_s16), 1 }
   0xe   : > { %s1453_s17 = sshll.u32 %s1747_s16, 3 }
   0xf   : > { %s192_s20 = scalar_lea.vmem %s1741_s0, %s1453_s17 }
  0x10   : > { %v211_v8 = vld [vmem:[%s192_s20] sm:$0xff] }
  0x11   : > { %v210_v9 = vld [vmem:[%s192_s20] sm:$0x3f]  ;;  %v220_v10 = vrot.slane %v211_v8, %v219_v7  ;;  %v213_v11 = vcombine.high %v211_v8, %v211_v8  ;;  %v203_v8 = vld [vmem:[%s1742_s1 + $0x10] sm:$0xf] }
  0x12   : > { %v1616_v12 = vrot.slane %v210_v9, %v219_v7  ;;  %v338_v13 = vcombine.high %v210_v9, %v210_v9 }
  0x13   : > { %230 = vrot.lane.b32.xlu0 %v220_v10, %s1563_s21  ;;  %v228_v14 = vcombine.high %v220_v10, %v220_v10  ;;  %v227_v15 = vrot.slane %v213_v11, %v219_v7 }
  0x14   : > { %v1618_v16 = vrot.slane %v338_v13, %v219_v7  ;;  %v353_v23 = vcombine.high %v1616_v12, %v1616_v12  ;;  %v358_v32 = vsel %vm246_vm2, %v1616_v12, 0 }
  0x15   : > { %234 = vrot.lane.b32.xlu1 %v227_v15, %s1563_s21  ;;  %v229_v17 = vcombine.high %v227_v15, %v227_v15 }
  0x16   : > { %v364_v34 = vsel %vm246_vm2, %v1618_v16, 0 }
  0x17   : > { %232 = vrot.lane.b32.xlu0 %v228_v14, %s1563_s21 }
  0x19   : > { %236 = vrot.lane.b32.xlu1 %v229_v17, %s1563_s21 }
  0x1b   : > { %466 = vrot.lane.b32.xlu0 %v220_v10, %s1564_s22 }
  0x1d   : > { %468 = vrot.lane.b32.xlu1 %v228_v14, %s1564_s22 }
  0x1f   : > { %470 = vrot.lane.b32.xlu0 %v227_v15, %s1564_s22 }
  0x21   : > { %472 = vrot.lane.b32.xlu1 %v229_v17, %s1564_s22 }
  0x23   : > { %593 = vrot.lane.b32.xlu0 %v220_v10, %s1565_s23 }
  0x25   : > { %595 = vrot.lane.b32.xlu1 %v228_v14, %s1565_s23 }
  0x27   : > { %597 = vrot.lane.b32.xlu0 %v227_v15, %s1565_s23 }
  0x29   : > { %599 = vrot.lane.b32.xlu1 %v229_v17, %s1565_s23 }
  0x2b   : > { %720 = vrot.lane.b32.xlu0 %v220_v10, %s1566_s24 }
  0x2d   : > { %722 = vrot.lane.b32.xlu1 %v228_v14, %s1566_s24 }
  0x2f   : > { %724 = vrot.lane.b32.xlu0 %v227_v15, %s1566_s24 }
  0x31   : > { %726 = vrot.lane.b32.xlu1 %v229_v17, %s1566_s24 }
  0x33   : > { %847 = vrot.lane.b32.xlu0 %v220_v10, %s1567_s25 }
  0x35   : > { %849 = vrot.lane.b32.xlu1 %v228_v14, %s1567_s25 }
  0x37   : > { %851 = vrot.lane.b32.xlu0 %v227_v15, %s1567_s25 }
  0x39   : > { %853 = vrot.lane.b32.xlu1 %v229_v17, %s1567_s25 }
  0x3b   : > { %974 = vrot.lane.b32.xlu0 %v220_v10, %s1568_s26 }
  0x3d   : > { %976 = vrot.lane.b32.xlu1 %v228_v14, %s1568_s26 }
  0x3f   : > { %978 = vrot.lane.b32.xlu0 %v227_v15, %s1568_s26 }
  0x41   : > { %980 = vrot.lane.b32.xlu1 %v229_v17, %s1568_s26 }
  0x43   : > { %1101 = vrot.lane.b32.xlu0 %v220_v10, %s1569_s27 }
  0x45   : > { %1103 = vrot.lane.b32.xlu1 %v228_v14, %s1569_s27 }
  0x47   : > { %1105 = vrot.lane.b32.xlu0 %v227_v15, %s1569_s27 }
  0x49   : > { %1107 = vrot.lane.b32.xlu1 %v229_v17, %s1569_s27  ;;  %s1526_s27 = smul.u32 24, %s1747_s16 }
  0x4b   : > { %1228 = vrot.lane.b32.xlu0 %v220_v10, %s1570_s28  ;;  %s197_s30 = scalar_lea.vmem %s1745_s4, %s1526_s27 }
  0x4d   : > { %1230 = vrot.lane.b32.xlu1 %v228_v14, %s1570_s28 }
  0x4f   : > { %1232 = vrot.lane.b32.xlu0 %v227_v15, %s1570_s28 }
  0x51   : > { %1234 = vrot.lane.b32.xlu1 %v229_v17, %s1570_s28 }
  0x53   : > { %1338 = vperm.xlu0 %1547, %v208_v18   ;;  %v204_v18 = vld [vmem:[%s1742_s1 + $0x14] sm:$0xf] }
  0x55   : > { %1349 = vperm.xlu1 %1548, %v209_v19  }
  0x85   : > { %v231_v20 = vpop.permute.xlu0 %230 }
  0x87   : > { %v235_v21 = vpop.permute.xlu1 %234 }
  0x89   : > { %v233_v22 = vpop.permute.xlu0 %232 }
  0x8a   : > { %v240_v24 = vsel %vm238_vm1, %v233_v22, %v235_v21  ;;  %v239_v25 = vsel %vm238_vm1, %v231_v20, %v233_v22 }
  0x8b   : > { %1424 = vmatprep.subr.msk.bf16.mxu0 %vm246_vm2, %v240_v24  ;;  %v237_v26 = vpop.permute.xlu1 %236  ;;  %v248_v27 = vsel %vm246_vm2, %v239_v25, 0 }
  0x8c   : > { %257 = vmatpush1.bf16.msra.mxu0 %v248_v27  ;;  %v241_v28 = vsel %vm238_vm1, %v235_v21, %v237_v26 }
  0x8d   : > { %v254_v30 = vsel %vm246_vm2, %v241_v28, 0  ;;  %v467_v31 = vpop.permute.xlu0 %466  ;;  %1427 = vmatprep.subr.msk.bf16.mxu0 %vm246_vm2, %v353_v23  ;;  %v205_v28 = vld [vmem:[%s1742_s1 + $0x18] sm:$0xf] }
  0x8e   : > { %1473 = vmatpush3.bf16.msra.mxu1 %v254_v30 }
  0x8f   : > { %1425 = vmatmul.mubr.msk.bf16.vlgmr.msra.gmra.mrb[0].mxu0 %vm242_vm3, %v200_v29  ;;  %1478 = vmatprep.subr.bf16.mxu1 %v1560_v5  ;;  %v469_v33 = vpop.permute.xlu1 %468 }
  0x90   : > { %367 = vmatpush1.bf16.msra.mxu0 %v358_v32  ;;  %398 = vmatprep.mubr.bf16.mxu0 %v1561_v6  ;;  %v475_v36 = vsel %vm474_vm4, %v467_v31, %v469_v33 }
  0x91   : > { %1475 = vmatmul.mubr.msk.bf16.vlgmr.msra.gmra.mrb[0].mxu1 %vm242_vm3, %v200_v29  ;;  %v471_v35 = vpop.permute.xlu0 %470  ;;  %v482_v41 = vsel %vm246_vm2, %v475_v36, 0 }
  0x92   : > { %1479 = vmatpush3.bf16.msra.mxu1 %v364_v34  ;;  %v476_v37 = vsel %vm474_vm4, %v469_v33, %v471_v35  ;;  %1480 = vmatprep.mubr.msk.bf16.mxu1 %vm1562_vm0, %v1560_v5 }
  0x93   : > { %1430 = vmatprep.subr.msk.bf16.mxu0 %vm246_vm2, %v476_v37  ;;  %v473_v38 = vpop.permute.xlu1 %472  ;;  %1484 = vmatprep.subr.bf16.mxu1 %v1560_v5 }
  0x94   : > { %v477_v39 = vsel %vm474_vm4, %v471_v35, %v473_v38  ;;  %v206_v38 = vld [vmem:[%s1742_s1 + $0x1c] sm:$0xf] }
  0x95   : > { %v594_v42 = vpop.permute.xlu0 %593  ;;  %v488_v43 = vsel %vm246_vm2, %v477_v39, 0 }
  0x97   : > { %1428 = vmatmul.mubr.msk.bf16.vlgmr.msra.gmra.mrb[4].mxu0 %vm242_vm3, %v199_v40  ;;  %v596_v44 = vpop.permute.xlu1 %595 }
  0x98   : > { %491 = vmatpush1.bf16.msra.mxu0 %v482_v41  ;;  %522 = vmatprep.mubr.bf16.mxu0 %v1561_v6  ;;  %v602_v46 = vsel %vm601_vm5, %v594_v42, %v596_v44  ;;  %v207_v41 = vld [vmem:[%s1742_s1 + $0x20] sm:$0xf] }
  0x99   : > { %1481 = vmatmul.mubr.msk.bf16.vlgmr.msra.gmra.mrb[4].mxu1 %vm242_vm3, %v199_v40  ;;  %v598_v45 = vpop.permute.xlu0 %597  ;;  %v609_v51 = vsel %vm246_vm2, %v602_v46, 0 }
  0x9a   : > { %1485 = vmatpush3.bf16.msra.mxu1 %v488_v43  ;;  %v603_v47 = vsel %vm601_vm5, %v596_v44, %v598_v45  ;;  %1486 = vmatprep.mubr.msk.bf16.mxu1 %vm1562_vm0, %v1560_v5 }
  0x9b   : > { %1433 = vmatprep.subr.msk.bf16.mxu0 %vm246_vm2, %v603_v47  ;;  %v600_v48 = vpop.permute.xlu1 %599  ;;  %1490 = vmatprep.subr.bf16.mxu1 %v1560_v5 }
  0x9c   : > { %v604_v49 = vsel %vm601_vm5, %v598_v45, %v600_v48 }
  0x9d   : > { %v721_v52 = vpop.permute.xlu0 %720  ;;  %v615_v53 = vsel %vm246_vm2, %v604_v49, 0 }
  0x9f   : > { %1431 = vmatmul.mubr.msk.bf16.vlgmr.msra.gmra.mrb[8].mxu0 %vm242_vm3, %v201_v50  ;;  %v723_v54 = vpop.permute.xlu1 %722 }
  0xa0   : > { %618 = vmatpush1.bf16.msra.mxu0 %v609_v51  ;;  %649 = vmatprep.mubr.bf16.mxu0 %v1561_v6  ;;  %v729_v56 = vsel %vm728_vm6, %v721_v52, %v723_v54 }
  0xa1   : > { %1487 = vmatmul.mubr.msk.bf16.vlgmr.msra.gmra.mrb[8].mxu1 %vm242_vm3, %v201_v50  ;;  %v725_v55 = vpop.permute.xlu0 %724  ;;  %v736_v61 = vsel %vm246_vm2, %v729_v56, 0 }
  0xa2   : > { %1491 = vmatpush3.bf16.msra.mxu1 %v615_v53  ;;  %v730_v57 = vsel %vm728_vm6, %v723_v54, %v725_v55  ;;  %1492 = vmatprep.mubr.msk.bf16.mxu1 %vm1562_vm0, %v1560_v5 }
  0xa3   : > { %1436 = vmatprep.subr.msk.bf16.mxu0 %vm246_vm2, %v730_v57  ;;  %v727_v58 = vpop.permute.xlu1 %726  ;;  %1496 = vmatprep.subr.bf16.mxu1 %v1560_v5 }
  0xa4   : > { %v731_v59 = vsel %vm728_vm6, %v725_v55, %v727_v58 }
  0xa5   : > { %v848_v62 = vpop.permute.xlu0 %847  ;;  %v742_v63 = vsel %vm246_vm2, %v731_v59, 0 }
  0xa7   : > { %1434 = vmatmul.mubr.msk.bf16.vlgmr.msra.gmra.mrb[12].mxu0 %vm242_vm3, %v202_v60  ;;  %v850_v0 = vpop.permute.xlu1 %849 }
  0xa8   : > { %745 = vmatpush1.bf16.msra.mxu0 %v736_v61  ;;  %776 = vmatprep.mubr.bf16.mxu0 %v1561_v6  ;;  %v856_v2 = vsel %vm855_vm7, %v848_v62, %v850_v0 }
  0xa9   : > { %1493 = vmatmul.mubr.msk.bf16.vlgmr.msra.gmra.mrb[12].mxu1 %vm242_vm3, %v202_v60  ;;  %v852_v1 = vpop.permute.xlu0 %851  ;;  %v863_v9 = vsel %vm246_vm2, %v856_v2, 0 }
  0xaa   : > { %1497 = vmatpush3.bf16.msra.mxu1 %v742_v63  ;;  %v857_v3 = vsel %vm855_vm7, %v850_v0, %v852_v1  ;;  %1498 = vmatprep.mubr.msk.bf16.mxu1 %vm1562_vm0, %v1560_v5 }
  0xab   : > { %1439 = vmatprep.subr.msk.bf16.mxu0 %vm246_vm2, %v857_v3  ;;  %v854_v4 = vpop.permute.xlu1 %853  ;;  %1502 = vmatprep.subr.bf16.mxu1 %v1560_v5 }
  0xac   : > { %v858_v7 = vsel %vm855_vm7, %v852_v1, %v854_v4 }
  0xad   : > { %v975_v10 = vpop.permute.xlu0 %974  ;;  %v869_v11 = vsel %vm246_vm2, %v858_v7, 0 }
  0xaf   : > { %1437 = vmatmul.mubr.msk.bf16.vlgmr.msra.gmra.mrb[16].mxu0 %vm242_vm3, %v203_v8  ;;  %v977_v12 = vpop.permute.xlu1 %976 }
  0xb0   : > { %872 = vmatpush1.bf16.msra.mxu0 %v863_v9  ;;  %903 = vmatprep.mubr.bf16.mxu0 %v1561_v6  ;;  %v983_v14 = vsel %vm982_vm8, %v975_v10, %v977_v12 }
  0xb1   : > { %1499 = vmatmul.mubr.msk.bf16.vlgmr.msra.gmra.mrb[16].mxu1 %vm242_vm3, %v203_v8  ;;  %v979_v13 = vpop.permute.xlu0 %978  ;;  %v990_v19 = vsel %vm246_vm2, %v983_v14, 0 }
  0xb2   : > { %1503 = vmatpush3.bf16.msra.mxu1 %v869_v11  ;;  %v984_v15 = vsel %vm982_vm8, %v977_v12, %v979_v13  ;;  %1504 = vmatprep.mubr.msk.bf16.mxu1 %vm1562_vm0, %v1560_v5 }
  0xb3   : > { %1442 = vmatprep.subr.msk.bf16.mxu0 %vm246_vm2, %v984_v15  ;;  %v981_v16 = vpop.permute.xlu1 %980  ;;  %1508 = vmatprep.subr.bf16.mxu1 %v1560_v5 }
  0xb4   : > { %v985_v17 = vsel %vm982_vm8, %v979_v13, %v981_v16 }
  0xb5   : > { %v1102_v20 = vpop.permute.xlu0 %1101  ;;  %v996_v21 = vsel %vm246_vm2, %v985_v17, 0 }
  0xb7   : > { %1440 = vmatmul.mubr.msk.bf16.vlgmr.msra.gmra.mrb[20].mxu0 %vm242_vm3, %v204_v18  ;;  %v1104_v22 = vpop.permute.xlu1 %1103 }
  0xb8   : > { %999 = vmatpush1.bf16.msra.mxu0 %v990_v19  ;;  %1030 = vmatprep.mubr.bf16.mxu0 %v1561_v6  ;;  %v1110_v24 = vsel %vm1109_vm9, %v1102_v20, %v1104_v22 }
  0xb9   : > { %1505 = vmatmul.mubr.msk.bf16.vlgmr.msra.gmra.mrb[20].mxu1 %vm242_vm3, %v204_v18  ;;  %v1106_v23 = vpop.permute.xlu0 %1105  ;;  %v1117_v29 = vsel %vm246_vm2, %v1110_v24, 0 }
  0xba   : > { %1509 = vmatpush3.bf16.msra.mxu1 %v996_v21  ;;  %v1111_v25 = vsel %vm1109_vm9, %v1104_v22, %v1106_v23  ;;  %1510 = vmatprep.mubr.msk.bf16.mxu1 %vm1562_vm0, %v1560_v5 }
  0xbb   : > { %1445 = vmatprep.subr.msk.bf16.mxu0 %vm246_vm2, %v1111_v25  ;;  %v1108_v26 = vpop.permute.xlu1 %1107  ;;  %1514 = vmatprep.subr.bf16.mxu1 %v1560_v5 }
  0xbc   : > { %v1112_v27 = vsel %vm1109_vm9, %v1106_v23, %v1108_v26 }
  0xbd   : > { %v1229_v30 = vpop.permute.xlu0 %1228  ;;  %v1123_v31 = vsel %vm246_vm2, %v1112_v27, 0 }
  0xbf   : > { %1443 = vmatmul.mubr.msk.bf16.vlgmr.msra.gmra.mrb[24].mxu0 %vm242_vm3, %v205_v28  ;;  %v1231_v32 = vpop.permute.xlu1 %1230 }
  0xc0   : > { %1126 = vmatpush1.bf16.msra.mxu0 %v1117_v29  ;;  %1157 = vmatprep.mubr.bf16.mxu0 %v1561_v6  ;;  %v1237_v34 = vsel %vm1236_vm10, %v1229_v30, %v1231_v32 }
  0xc1   : > { %1511 = vmatmul.mubr.msk.bf16.vlgmr.msra.gmra.mrb[24].mxu1 %vm242_vm3, %v205_v28  ;;  %v1233_v33 = vpop.permute.xlu0 %1232  ;;  %v1244_v39 = vsel %vm246_vm2, %v1237_v34, 0 }
  0xc2   : > { %1515 = vmatpush3.bf16.msra.mxu1 %v1123_v31  ;;  %v1238_v35 = vsel %vm1236_vm10, %v1231_v32, %v1233_v33  ;;  %1516 = vmatprep.mubr.msk.bf16.mxu1 %vm1562_vm0, %v1560_v5 }
  0xc3   : > { %1448 = vmatprep.subr.msk.bf16.mxu0 %vm246_vm2, %v1238_v35  ;;  %v1235_v36 = vpop.permute.xlu1 %1234  ;;  %1520 = vmatprep.subr.bf16.mxu1 %v1560_v5 }
  0xc4   : > { %v1239_v37 = vsel %vm1236_vm10, %v1233_v33, %v1235_v36 }
  0xc5   : > { %v1250_v40 = vsel %vm246_vm2, %v1239_v37, 0 }
  0xc7   : > { %1446 = vmatmul.mubr.msk.bf16.vlgmr.msra.gmra.mrb[28].mxu0 %vm242_vm3, %v206_v38 }
  0xc8   : > { %1253 = vmatpush1.bf16.msra.mxu0 %v1244_v39  ;;  %1284 = vmatprep.mubr.bf16.mxu0 %v1561_v6 }
  0xc9   : > { %1517 = vmatmul.mubr.msk.bf16.vlgmr.msra.gmra.mrb[28].mxu1 %vm242_vm3, %v206_v38 }
  0xca   : > { %1521 = vmatpush3.bf16.msra.mxu1 %v1250_v40  ;;  %1522 = vmatprep.mubr.msk.bf16.mxu1 %vm1562_vm0, %v1560_v5 }
  0xcf   : > { %1449 = vmatmul.mubr.msk.bf16.vlgmr.msra.gmra.mrb[32].mxu0 %vm242_vm3, %v207_v41 }
  0xd1   : > { %1523 = vmatmul.mubr.msk.bf16.vlgmr.msra.gmra.mrb[32].mxu1 %vm242_vm3, %v207_v41 }
 0x162   : > { %v290_v42 = vpop.f32.mrb[0].mxu0 }
 0x163   : > { %v292_v43 = vpop.f32.mrb[1].mxu0 }
 0x164   : > { %v294_v44 = vpop.f32.mrb[2].mxu0  ;;  %v331_v45 = vpop.f32.mrb[0].mxu1 }
 0x165   : > { %v295_v46 = vpop.f32.mrb[3].mxu0  ;;  %v1476_v6 = vpop.f32.mrb[1].mxu1 }
 0x166   : > { %v334_v47 = vpop.f32.mrb[2].mxu1 }
 0x167   : > { %v1477_v48 = vpop.f32.mrb[3].mxu1 }
 0x16a   : > { %v400_v49 = vpop.f32.mrb[4].mxu0 }
 0x16b   : > { %v401_v50 = vadd.f32 %v400_v49, %v290_v42  ;;  %v402_v51 = vpop.f32.mrb[5].mxu0 }
 0x16c   : > { %v403_v5 = vadd.f32 %v402_v51, %v292_v43  ;;  %v404_v52 = vpop.f32.mrb[6].mxu0  ;;  %v441_v53 = vpop.f32.mrb[4].mxu1 }
 0x16d   : > { %v442_v54 = vadd.f32 %v441_v53, %v331_v45  ;;  %v405_v55 = vpop.f32.mrb[7].mxu0  ;;  %v1482_v56 = vpop.f32.mrb[5].mxu1 }
 0x16e   : > { %v444_v57 = vpop.f32.mrb[6].mxu1 }
 0x16f   : > { %v1483_v58 = vpop.f32.mrb[7].mxu1 }
 0x172   : > { %v524_v59 = vpop.f32.mrb[8].mxu0 }
 0x173   : > { %v571_v60 = vadd.f32 %v524_v59, %v401_v50  ;;  %v526_v61 = vpop.f32.mrb[9].mxu0 }
 0x174   : > { %v572_v62 = vadd.f32 %v526_v61, %v403_v5  ;;  %v528_v63 = vpop.f32.mrb[10].mxu0  ;;  %v565_v0 = vpop.f32.mrb[8].mxu1 }
 0x175   : > { %v573_v1 = vadd.f32 %v565_v0, %v442_v54  ;;  %v529_v2 = vpop.f32.mrb[11].mxu0  ;;  %v1488_v3 = vpop.f32.mrb[9].mxu1 }
 0x176   : > { %v568_v4 = vpop.f32.mrb[10].mxu1 }
 0x177   : > { %v1489_v7 = vpop.f32.mrb[11].mxu1 }
 0x17a   : > { %v651_v8 = vpop.f32.mrb[12].mxu0 }
 0x17b   : > { %v698_v9 = vadd.f32 %v651_v8, %v571_v60  ;;  %v653_v10 = vpop.f32.mrb[13].mxu0 }
 0x17c   : > { %v699_v11 = vadd.f32 %v653_v10, %v572_v62  ;;  %v655_v12 = vpop.f32.mrb[14].mxu0  ;;  %v692_v13 = vpop.f32.mrb[12].mxu1 }
 0x17d   : > { %v700_v14 = vadd.f32 %v692_v13, %v573_v1  ;;  %v656_v15 = vpop.f32.mrb[15].mxu0  ;;  %v1494_v16 = vpop.f32.mrb[13].mxu1 }
 0x17e   : > { %v695_v17 = vpop.f32.mrb[14].mxu1  ;;  %v1339_v62 = vpop.permute.xlu0 %1338 }
 0x17f   : > { %v1495_v18 = vpop.f32.mrb[15].mxu1  ;;  %v1350_v1 = vpop.permute.xlu1 %1349 }
 0x182   : > { %v778_v19 = vpop.f32.mrb[16].mxu0 }
 0x183   : > { %v825_v20 = vadd.f32 %v778_v19, %v698_v9  ;;  %v780_v21 = vpop.f32.mrb[17].mxu0 }
 0x184   : > { %v826_v22 = vadd.f32 %v780_v21, %v699_v11  ;;  %v782_v23 = vpop.f32.mrb[18].mxu0  ;;  %v819_v24 = vpop.f32.mrb[16].mxu1 }
 0x185   : > { %v827_v25 = vadd.f32 %v819_v24, %v700_v14  ;;  %v783_v26 = vpop.f32.mrb[19].mxu0  ;;  %v1500_v27 = vpop.f32.mrb[17].mxu1 }
 0x186   : > { %v822_v28 = vpop.f32.mrb[18].mxu1 }
 0x187   : > { %v1501_v29 = vpop.f32.mrb[19].mxu1 }
 0x18a   : > { %v905_v30 = vpop.f32.mrb[20].mxu0 }
 0x18b   : > { %v952_v31 = vadd.f32 %v905_v30, %v825_v20  ;;  %v907_v32 = vpop.f32.mrb[21].mxu0 }
 0x18c   : > { %v953_v33 = vadd.f32 %v907_v32, %v826_v22  ;;  %v909_v34 = vpop.f32.mrb[22].mxu0  ;;  %v946_v35 = vpop.f32.mrb[20].mxu1 }
 0x18d   : > { %v954_v36 = vadd.f32 %v946_v35, %v827_v25  ;;  %v910_v37 = vpop.f32.mrb[23].mxu0  ;;  %v1506_v38 = vpop.f32.mrb[21].mxu1 }
 0x18e   : > { %v949_v39 = vpop.f32.mrb[22].mxu1 }
 0x18f   : > { %v1507_v40 = vpop.f32.mrb[23].mxu1 }
 0x192   : > { %v1032_v41 = vpop.f32.mrb[24].mxu0 }
 0x193   : > { %v1079_v42 = vadd.f32 %v1032_v41, %v952_v31  ;;  %v1034_v43 = vpop.f32.mrb[25].mxu0 }
 0x194   : > { %v1080_v44 = vadd.f32 %v1034_v43, %v953_v33  ;;  %v1036_v45 = vpop.f32.mrb[26].mxu0  ;;  %v1073_v46 = vpop.f32.mrb[24].mxu1 }
 0x195   : > { %v1081_v6 = vadd.f32 %v1073_v46, %v954_v36  ;;  %v1037_v47 = vpop.f32.mrb[27].mxu0  ;;  %v1512_v48 = vpop.f32.mrb[25].mxu1 }
 0x196   : > { %v1076_v49 = vpop.f32.mrb[26].mxu1 }
 0x197   : > { %v1513_v50 = vpop.f32.mrb[27].mxu1 }
 0x19a   : > { %v1159_v51 = vpop.f32.mrb[28].mxu0 }
 0x19b   : > { %v1206_v5 = vadd.f32 %v1159_v51, %v1079_v42  ;;  %v1161_v52 = vpop.f32.mrb[29].mxu0 }
 0x19c   : > { %v1207_v53 = vadd.f32 %v1161_v52, %v1080_v44  ;;  %v1163_v54 = vpop.f32.mrb[30].mxu0  ;;  %v1200_v55 = vpop.f32.mrb[28].mxu1 }
 0x19d   : > { %v1208_v56 = vadd.f32 %v1200_v55, %v1081_v6  ;;  %v1164_v57 = vpop.f32.mrb[31].mxu0  ;;  %v1518_v58 = vpop.f32.mrb[29].mxu1 }
 0x19e   : > { %v1203_v59 = vpop.f32.mrb[30].mxu1 }
 0x19f   : > { %v1519_v60 = vpop.f32.mrb[31].mxu1 }
 0x1a2   : > { %v1286_v61 = vpop.f32.mrb[32].mxu0 }
 0x1a3   : > { %v1333_v63 = vadd.f32 %v1286_v61, %v1206_v5  ;;  %v1288_v0 = vpop.f32.mrb[33].mxu0 }
 0x1a4   : > { %v1334_v2 = vadd.f32 %v1288_v0, %v1207_v53  ;;  %v1290_v3 = vpop.f32.mrb[34].mxu0  ;;  %v1327_v4 = vpop.f32.mrb[32].mxu1 }
 0x1a5   : > { %v1341_v7 = vadd.f32 %v1339_v62, %v1333_v63  ;;  %v1335_v8 = vadd.f32 %v1327_v4, %v1208_v56  ;;  %v1291_v9 = vpop.f32.mrb[35].mxu0  ;;  %v1524_v10 = vpop.f32.mrb[33].mxu1 }
 0x1a6   : > { %v1342_v11 = vadd.f32 %v1339_v62, %v1334_v2  ;;  %v1330_v12 = vpop.f32.mrb[34].mxu1 }
 0x1a7   : > { %vm1344_vm11 = vcmp.gt.f32.partialorder %v1341_v7, 0.0  ;;  %v1343_v13 = vadd.f32 %v1339_v62, %v1335_v8  ;;  %v1352_v14 = vmul.f32 %v1350_v1, %v1341_v7  ;;  %v1525_v15 = vpop.f32.mrb[35].mxu1 }
 0x1a8   : > { %vm1345_vm12 = vcmp.gt.f32.partialorder %v1342_v11, 0.0  ;;  %v1353_v16 = vmul.f32 %v1350_v1, %v1342_v11 }
 0x1a9   : > { %vm1346_vm13 = vcmp.gt.f32.partialorder %v1343_v13, 0.0  ;;  %v1354_v17 = vmul.f32 %v1350_v1, %v1343_v13  ;;  %v1355_v18 = vsel %vm1344_vm11, %v1341_v7, %v1352_v14 }
 0x1aa   : > { %v1356_v19 = vsel %vm1345_vm12, %v1342_v11, %v1353_v16  ;;  %1358 = vst [vmem:[%s197_s30] sm:$0xff] %v1355_v18 }
 0x1ab   : > { %v1357_v20 = vsel %vm1346_vm13, %v1343_v13, %v1354_v17  ;;  %1359 = vst [vmem:[%s197_s30 + $0x8] sm:$0xff] %v1356_v19 }
 0x1ac   : > { %1360 = vst [vmem:[%s197_s30 + $0x10] sm:$0xff] %v1357_v20 }
 0x1ad PF: > { %s14_s15 = sadd.s32 1, %s1557_s15  }
 0x1ae   : > { %p11_p4 = scmp.ge.s32.totalorder %s14_s15, 4  }
 0x1b0   :  { %13 = sbr.rel (!%p11_p4) target bundleno = 1 (0x1), region = 66 }

</bundles_post_ra>
